<compile_context>
chip_gen: v7x
topology: tpu7x:2x2x1
jax: 0.10.0
libtpu: 0.0.40
codegen_flags: <defaults>
</compile_context>

<pallas_src>
import functools

import jax
import jax.numpy as jnp
from jax import lax
from jax.experimental import pallas as pl
from jax.experimental.pallas import tpu as pltpu

IGNORE_INDEX = -100


def _ce_kernel(logits_ref, labels_ref, out_ref, *, v_chunk: int):
    """One (R, V) tile of next-token cross-entropy -> (1, 2) [sum, count] partial.

    logits_ref: (R, V)  input-dtype VMEM tile (unshifted logits rows)
    labels_ref: (R, 1)  int32 VMEM tile (already next-token-shifted labels)
    out_ref:    (1, 2)  f32 partial for this (batch, row-tile) grid point.
    """
    labels = labels_ref[...]                                  # (R, 1) int32
    valid = labels != IGNORE_INDEX                            # (R, 1) bool

    R, V = logits_ref.shape
    num_full = V // v_chunk
    rem = V - num_full * v_chunk

    def update(carry, chunk_f32, col0):
        """Online-logsumexp + picked-logit update for one vocab chunk."""
        m, s, picked = carry
        col = lax.broadcasted_iota(jnp.int32, chunk_f32.shape, 1) + col0
        m_new = jnp.maximum(m, jnp.max(chunk_f32, axis=-1, keepdims=True))
        s = s * jnp.exp(m - m_new) + jnp.sum(
            jnp.exp(chunk_f32 - m_new), axis=-1, keepdims=True)
        # Exactly one column over all chunks matches the label, so a plain sum
        # of the selected value is exact.
        picked = picked + jnp.sum(
            jnp.where(col == labels, chunk_f32, 0.0), axis=-1, keepdims=True)
        return m_new, s, picked

    carry = (
        jnp.full((R, 1), -jnp.inf, jnp.float32),   # running max
        jnp.zeros((R, 1), jnp.float32),            # running sum(exp(. - max))
        jnp.zeros((R, 1), jnp.float32),            # logit at the target label
    )

    # Statically-unrolled chunk loop: every pl.ds start/size is a trace-time
    # constant (aligned vector loads, no dynamic lane slicing). Only the small
    # (R, 1) carries stay live across chunks.
    off = 0
    for _ in range(num_full):
        chunk = logits_ref[:, pl.ds(off, v_chunk)].astype(jnp.float32)
        carry = update(carry, chunk, off)
        off += v_chunk
    if rem > 0:
        chunk = logits_ref[:, pl.ds(off, rem)].astype(jnp.float32)
        carry = update(carry, chunk, off)

    m, s, picked = carry
    lse = jnp.log(s) + m                                      # (R, 1)

    # where-select (not multiply) so garbage logits in padded / shifted-out rows
    # (incl. OOB rows of the last T-tile) can never leak NaN/Inf into the sum.
    per_row = jnp.where(valid, lse - picked, 0.0)             # (R, 1)

    tile_sum = jnp.sum(per_row)                               # f32 scalar
    tile_cnt = jnp.sum(valid.astype(jnp.float32))             # exact: <= R <= 2048

    lane = lax.broadcasted_iota(jnp.int32, out_ref.shape, 1)  # (1, 2)
    out_ref[...] = jnp.where(lane == 0, tile_sum, tile_cnt)   # single write, no RMW


def _vmem_budgets() -> tuple[int, int]:
    """(tile VMEM budget, vmem_limit_bytes), generation-aware.

    128 MiB parts (v5e/v6e) get a large budget; 64 MiB-per-TC v7x (or an
    unknown part / failed query) gets the conservative sizing.
    """
    cap = 0
    try:
        cap = int(pltpu.get_tpu_info().vmem_capacity_bytes)
    except Exception:
        cap = 0
    if cap >= 96 * 1024 * 1024:                   # v5e / v6e: 128 MiB physical VMEM
        return 90 * 1024 * 1024, 110 * 1024 * 1024
    return 34 * 1024 * 1024, 48 * 1024 * 1024     # v7x per-TC 64 MiB, or unknown


def _pick_v_chunk(V: int) -> int:
    # <=4K-lane chunks bound f32/i32 intermediates; no chunk loop for small V.
    return V if V <= 4096 else 4096


def _pick_row_tile(T: int, V: int, in_itemsize: int, v_chunk: int,
                   budget_bytes: int) -> int:
    """Largest row tile that keeps the pipeline inside the VMEM budget.

    Per row of the tile we hold roughly:
      2 x input tile (double-buffered BlockSpec pipeline): 2 * itemsize * V bytes
      ~4 x chunk-wide f32/i32 kernel intermediates       : 16 * v_chunk bytes
      carries / labels / slack                           : ~128 bytes
    """
    per_row = 2 * in_itemsize * V + 16 * v_chunk + 128
    r = int(budget_bytes // max(per_row, 1))
    r = max(8, min(r, 2048))
    r -= r % 8
    # Prefer full packed (16,128) vregs for sub-32-bit inputs when affordable.
    if in_itemsize < 4:
        if r >= 16:
            r -= r % 16
        elif 16 * per_row <= budget_bytes:
            r = 16
    # Never bigger than needed to cover the (8-padded) sequence length.
    t_ceil = -(-T // 8) * 8
    r = min(r, max(t_ceil, 8))
    return max(r, 8)


def gpt_lm_loss(logits: jax.Array, labels: jax.Array,
                row_tile: int | None = None,
                v_chunk: int | None = None) -> jax.Array:
    """Pallas implementation of GPTLMLoss.forward (mean shifted cross-entropy)."""
    B, T, V = logits.shape
    assert labels.shape == (B, T)

    itemsize = jnp.dtype(logits.dtype).itemsize
    budget, vmem_limit = _vmem_budgets()
    if v_chunk is None:
        v_chunk = _pick_v_chunk(V)
    v_chunk = min(v_chunk, V)
    if row_tile is None:
        row_tile = _pick_row_tile(T, V, itemsize, v_chunk, budget)

    num_t_tiles = pl.cdiv(T, row_tile)
    t_pad = num_t_tiles * row_tile

    # Fold the next-token shift into the (tiny) labels tensor: logits row t is
    # scored against labels[t + 1]; the final position of each sequence and any
    # tile padding past T become IGNORE_INDEX and are masked inside the kernel.
    # O(B*T) int32 work — the big (B, T, V) logits tensor is never copied.
    shifted = jnp.concatenate(
        [labels[:, 1:].astype(jnp.int32),
         jnp.full((B, t_pad - T + 1), IGNORE_INDEX, jnp.int32)],
        axis=1)                                   # (B, t_pad)
    labels3d = shifted.reshape(B, t_pad, 1)

    kernel = functools.partial(_ce_kernel, v_chunk=v_chunk)

    cost = pl.CostEstimate(
        flops=int(6 * B * T * V),
        transcendentals=int(B * T * V),
        bytes_accessed=int(B * T * V * itemsize + B * t_pad * 4
                           + B * num_t_tiles * 8),
    )

    partials = pl.pallas_call(
        kernel,
        out_shape=jax.ShapeDtypeStruct((B, num_t_tiles, 1, 2), jnp.float32),
        grid_spec=pltpu.PrefetchScalarGridSpec(
            num_scalar_prefetch=0,
            grid=(B, num_t_tiles),
            in_specs=[
                # Original, unshifted, un-cast logits; batch dim squeezed.
                pl.BlockSpec((None, row_tile, V), lambda b, t: (b, t, 0)),
                # Pre-shifted labels, padded with IGNORE_INDEX to t_pad.
                pl.BlockSpec((None, row_tile, 1), lambda b, t: (b, t, 0)),
            ],
            # One tiny (sum, count) partial per (batch, row-tile) grid point:
            # no cross-step accumulator, so both grid axes can be "parallel"
            # (keeps both v7x TensorCores busy even for B == 1 / odd B).
            out_specs=pl.BlockSpec((None, None, 1, 2),
                                   lambda b, t: (b, t, 0, 0)),
        ),
        compiler_params=pltpu.CompilerParams(
            dimension_semantics=("parallel", "parallel"),
            vmem_limit_bytes=vmem_limit,
        ),
        cost_estimate=cost,
    )(logits, labels3d)

    flat = partials.reshape(B * num_t_tiles, 2)
    loss_sum = jnp.sum(flat[:, 0])
    # Per-tile counts are exact small integers in f32; sum them in int32 so the
    # token count stays exact well past 2^24 tokens.
    tok_cnt = jnp.sum(flat[:, 1].astype(jnp.int32)).astype(jnp.float32)
    return loss_sum / tok_cnt


def _reference_loss(logits, labels):
    """Pure-JAX reference for the correctness check."""
    B, T, V = logits.shape
    sl = logits[:, :-1, :].reshape(-1, V).astype(jnp.float32)
    sy = labels[:, 1:].reshape(-1).astype(jnp.int32)
    lse = jax.nn.logsumexp(sl, axis=-1)
    picked = jnp.take_along_axis(sl, jnp.maximum(sy, 0)[:, None], axis=-1)[:, 0]
    valid = (sy != IGNORE_INDEX).astype(jnp.float32)
    return jnp.sum((lse - picked) * valid) / jnp.sum(valid)


if __name__ == "__main__":
    key = jax.random.PRNGKey(0)
    k1, k2, k3, k4 = jax.random.split(key, 4)

    # Test 1: small shapes (batch=2, seq=8, vocab=32), single vocab chunk,
    # T an exact multiple of the row tile; exercises ignore_index masking.
    B, T, V = 2, 8, 32
    logits = jax.random.normal(k1, (B, T, V), dtype=jnp.float32).astype(jnp.bfloat16)
    labels = jax.random.randint(k2, (B, T), 0, V, dtype=jnp.int32)
    labels = labels.at[0, 3].set(IGNORE_INDEX)

    out = jax.block_until_ready(gpt_lm_loss(logits, labels))
    ref = _reference_loss(logits, labels)
    assert jnp.allclose(out, ref, atol=1e-5, rtol=1e-5), (out, ref)

    # Test 2: T not a multiple of 8 / row_tile (partial last tile reads garbage
    # rows that must be fully masked) and V > v_chunk with a remainder chunk
    # (exercises the unrolled online-logsumexp chunk loop).
    B2, T2, V2 = 2, 13, 300
    logits2 = jax.random.normal(k3, (B2, T2, V2), dtype=jnp.float32).astype(jnp.bfloat16)
    labels2 = jax.random.randint(k4, (B2, T2), 0, V2, dtype=jnp.int32)
    labels2 = labels2.at[1, 5].set(IGNORE_INDEX)

    out2 = jax.block_until_ready(
        gpt_lm_loss(logits2, labels2, row_tile=8, v_chunk=128))
    ref2 = _reference_loss(logits2, labels2)
    assert jnp.allclose(out2, ref2, atol=1e-5, rtol=1e-5), (out2, ref2)

    print("KERNEL_OK")
</pallas_src>

<mosaic_0001>
module attributes {stable_mosaic.version = 11 : i64} {
  func.func @_ce_kernel(%arg0: i32, %arg1: i32, %arg2: memref<1x8x32xbf16, #tpu.memory_space<vmem>>, %arg3: memref<1x8x1xi32, #tpu.memory_space<vmem>>, %arg4: memref<1x1x1x2xf32, #tpu.memory_space<vmem>>) attributes {dimension_semantics = [#tpu.dimension_semantics<parallel>, #tpu.dimension_semantics<parallel>], iteration_bounds = array<i64: 2, 1>, scalar_prefetch = 0 : i64, scratch_operands = 0 : i64, tpu.core_type = #tpu.core_type<tc>, window_params = [{transform_indices = @transform_0, window_bounds = array<i64: 1, 8, 32>}, {transform_indices = @transform_1, window_bounds = array<i64: 1, 8, 1>}, {transform_indices = @transform_2, window_bounds = array<i64: 1, 1, 1, 2>}]} {
    %c0 = arith.constant 0 : index
    %c0_0 = arith.constant 0 : index
    %c0_1 = arith.constant 0 : index
    %0 = vector.load %arg3[%c0, %c0_0, %c0_1] : memref<1x8x1xi32, #tpu.memory_space<vmem>>, vector<1x8x1xi32>
    %1 = vector.shape_cast %0 : vector<1x8x1xi32> to vector<8x1xi32>
    %c-100_i32 = arith.constant -100 : i32
    %2 = vector.broadcast %c-100_i32 : i32 to vector<8x1xi32>
    %3 = arith.cmpi ne, %1, %2 : vector<8x1xi32>
    %cst = arith.constant 0xFF800000 : f32
    %4 = vector.broadcast %cst : f32 to vector<8x1xf32>
    %cst_2 = arith.constant 0.000000e+00 : f32
    %5 = vector.broadcast %cst_2 : f32 to vector<8x1xf32>
    %cst_3 = arith.constant 0.000000e+00 : f32
    %6 = vector.broadcast %cst_3 : f32 to vector<8x1xf32>
    %c0_4 = arith.constant 0 : index
    %c0_5 = arith.constant 0 : index
    %c0_6 = arith.constant 0 : index
    %7 = vector.load %arg2[%c0_4, %c0_5, %c0_6] : memref<1x8x32xbf16, #tpu.memory_space<vmem>>, vector<1x8x32xbf16>
    %8 = vector.shape_cast %7 : vector<1x8x32xbf16> to vector<8x32xbf16>
    %9 = arith.extf %8 : vector<8x32xbf16> to vector<8x32xf32>
    %10 = tpu.iota {dimensions = array<i32: 1>} : vector<8x32xi32>
    %c0_i32 = arith.constant 0 : i32
    %11 = vector.broadcast %c0_i32 : i32 to vector<8x32xi32>
    %12 = arith.addi %10, %11 : vector<8x32xi32>
    %cst_7 = arith.constant dense<0xFF800000> : vector<8xf32>
    %13 = vector.multi_reduction <maximumf>, %9, %cst_7 [1] : vector<8x32xf32> to vector<8xf32>
    %14 = vector.shape_cast %13 : vector<8xf32> to vector<8x1xf32>
    %15 = arith.maximumf %4, %14 : vector<8x1xf32>
    %16 = arith.subf %4, %15 : vector<8x1xf32>
    %17 = math.exp %16 : vector<8x1xf32>
    %18 = arith.mulf %5, %17 : vector<8x1xf32>
    %19 = vector.broadcast %15 : vector<8x1xf32> to vector<8x32xf32>
    %20 = arith.subf %9, %19 : vector<8x32xf32>
    %21 = math.exp %20 : vector<8x32xf32>
    %cst_8 = arith.constant dense<0.000000e+00> : vector<8xf32>
    %22 = vector.multi_reduction <add>, %21, %cst_8 [1] : vector<8x32xf32> to vector<8xf32>
    %23 = vector.shape_cast %22 : vector<8xf32> to vector<8x1xf32>
    %24 = arith.addf %18, %23 : vector<8x1xf32>
    %25 = vector.broadcast %1 : vector<8x1xi32> to vector<8x32xi32>
    %26 = arith.cmpi eq, %12, %25 : vector<8x32xi32>
    %cst_9 = arith.constant 0.000000e+00 : f32
    %27 = vector.broadcast %cst_9 : f32 to vector<8x32xf32>
    %28 = arith.select %26, %9, %27 : vector<8x32xi1>, vector<8x32xf32>
    %cst_10 = arith.constant dense<0.000000e+00> : vector<8xf32>
    %29 = vector.multi_reduction <add>, %28, %cst_10 [1] : vector<8x32xf32> to vector<8xf32>
    %30 = vector.shape_cast %29 : vector<8xf32> to vector<8x1xf32>
    %31 = arith.addf %6, %30 : vector<8x1xf32>
    %32 = math.log %24 : vector<8x1xf32>
    %33 = arith.addf %32, %15 : vector<8x1xf32>
    %34 = arith.subf %33, %31 : vector<8x1xf32>
    %cst_11 = arith.constant 0.000000e+00 : f32
    %35 = vector.broadcast %cst_11 : f32 to vector<8x1xf32>
    %36 = arith.select %3, %34, %35 : vector<8x1xi1>, vector<8x1xf32>
    %37 = vector.shape_cast %36 : vector<8x1xf32> to vector<1x8x1xf32>
    %cst_12 = arith.constant dense<0.000000e+00> : vector<1xf32>
    %38 = vector.multi_reduction <add>, %37, %cst_12 [1, 2] : vector<1x8x1xf32> to vector<1xf32>
    %39 = vector.shape_cast %38 : vector<1xf32> to vector<1x1x1xf32>
    %40 = vector.extract %39[0, 0, 0] : f32 from vector<1x1x1xf32>
    %41 = arith.extui %3 : vector<8x1xi1> to vector<8x1xi32>
    %42 = arith.sitofp %41 : vector<8x1xi32> to vector<8x1xf32>
    %43 = vector.shape_cast %42 : vector<8x1xf32> to vector<1x8x1xf32>
    %cst_13 = arith.constant dense<0.000000e+00> : vector<1xf32>
    %44 = vector.multi_reduction <add>, %43, %cst_13 [1, 2] : vector<1x8x1xf32> to vector<1xf32>
    %45 = vector.shape_cast %44 : vector<1xf32> to vector<1x1x1xf32>
    %46 = vector.extract %45[0, 0, 0] : f32 from vector<1x1x1xf32>
    %47 = tpu.iota {dimensions = array<i32: 1>} : vector<1x2xi32>
    %c0_i32_14 = arith.constant 0 : i32
    %48 = vector.broadcast %c0_i32_14 : i32 to vector<1x2xi32>
    %49 = arith.cmpi eq, %47, %48 : vector<1x2xi32>
    %50 = vector.broadcast %40 : f32 to vector<1x2xf32>
    %51 = vector.broadcast %46 : f32 to vector<1x2xf32>
    %52 = arith.select %49, %50, %51 : vector<1x2xi1>, vector<1x2xf32>
    %c0_15 = arith.constant 0 : index
    %c0_16 = arith.constant 0 : index
    %c0_17 = arith.constant 0 : index
    %c0_18 = arith.constant 0 : index
    %53 = vector.load %arg4[%c0_15, %c0_16, %c0_17, %c0_18] : memref<1x1x1x2xf32, #tpu.memory_space<vmem>>, vector<1x1x1x2xf32>
    %54 = vector.shape_cast %53 : vector<1x1x1x2xf32> to vector<1x2xf32>
    %55 = vector.shape_cast %52 : vector<1x2xf32> to vector<1x1x1x2xf32>
    tpu.vector_store %arg4[%c0_15, %c0_16, %c0_17, %c0_18], %55 {strides = array<i32>} : memref<1x1x1x2xf32, #tpu.memory_space<vmem>>, vector<1x1x1x2xf32>,
    return
  }
  func.func @transform_0(%arg0: i32, %arg1: i32) -> (i32, i32, i32) {
    %c0_i32 = arith.constant 0 : i32
    %c0_i32_0 = arith.constant 0 : i32
    return %arg0, %arg1, %c0_i32 : i32, i32, i32
  }
  func.func @transform_1(%arg0: i32, %arg1: i32) -> (i32, i32, i32) {
    %c0_i32 = arith.constant 0 : i32
    %c0_i32_0 = arith.constant 0 : i32
    return %arg0, %arg1, %c0_i32 : i32, i32, i32
  }
  func.func @transform_2(%arg0: i32, %arg1: i32) -> (i32, i32, i32, i32) {
    %c0_i32 = arith.constant 0 : i32
    %c0_i32_0 = arith.constant 0 : i32
    %c0_i32_1 = arith.constant 0 : i32
    return %arg0, %arg1, %c0_i32, %c0_i32_0 : i32, i32, i32, i32
  }
}

</mosaic_0001>

<bundles_post_ra>
// kernel: tpu_custom_call.1
= control target key start
LH: loop header
LB: loop body
LE: loop exit
PB: predicated region body
PF: predicated region fallthrough
CT: control target
= control target key end

     0   :  { %7 = vsyncpa [#allocation3], 0  ;;  %s646_s0 = inlined_call_operand.vmem [shape: bf16[2,8,32], index: 0, kind: input, shape index: {}]   ;;  %s647_s1 = inlined_call_operand.vmem [shape: s32[2,8,1], index: 1, kind: input, shape index: {}]   ;;  %s648_s2 = inlined_call_operand.hbm [shape: f32[2,1,1,2], index: 2, kind: output, shape index: {}]  }
   0x1   :  { %9 = vsyncpa [#allocation3 + $0x1], 0  ;;  %s528_s9 = smov 0   ;;  %s530_s10 = smov 0  }
   0x2   :  { %s532_s11 = smov 0   ;;  %s534_s12 = smov 0  }
   0x3   :  { %s536_s13 = smov 0   ;;  %s538_s14 = smov 0  }
   0x4 LB: > { %s351_s15 = sadd.s32 4294967295, %s508_s14   ;;  %s352_s16 = sadd.s32 4294967294, %s508_s14   ;;  %s508_s14 = sphi %s538_s14, %s15_s14   ;;  %s504_s13 = sphi %s536_s13, %s655_s13   ;;  %s500_s12 = sphi %s534_s12, %s654_s12   ;;  %s496_s11 = sphi %s532_s11, %s653_s11   ;;  %s492_s10 = sphi %s530_s10, %s652_s10   ;;  %s488_s9 = sphi %s528_s9, %s651_s9  }
   0x5   : > { %s27_s17 = sadd.s32 1, %s504_s13  ;;  %s92_s18 = sadd.s32 1, %s496_s11 }
   0x6   : > { %p29_p0 = scmp.ge.s32.totalorder %s27_s17, 2  ;;  %p102_p1 = scmp.ne.s32.totalorder %s496_s11, %s492_s10 }
   0x7   : > { %p103_p2 = scmp.eq.s32.totalorder %s351_s15, 1  ;;  %p108_p3 = scmp.ne.s32.totalorder %s492_s10, %s488_s9 }
   0x8   : > { %s657_s17 = smov (%p29_p0, %s27_s17), 0  ;;  %p109_p5 = scmp.eq.s32.totalorder %s352_s16, 1 }
   0x9   : > { %p568_p4 = por %p103_p2, %p102_p1  ;;  %s87_s20 = ssub.s32 %s504_s13, %s657_s17 }
   0xa   : > { %p355_p6 = scmp.ge.s32.totalorder %s508_s14, 1  ;;  %p90_p7 = scmp.eq.s32.totalorder %s87_s20, 0 }
   0xb   : > { %p575_p8 = por %p109_p5, %p108_p3  ;;  %p147_p9 = scmp.lt.s32.totalorder %s508_s14, 3 }
   0xc   : > { %s581_s22 = scalar_select %p90_p7, %s496_s11, %s92_s18  }
   0xd   : > { %p148_p10 = pnand %p355_p6, %p147_p9 }
   0xe   : > { %p177_p11 = scmp.lt.s32.totalorder (!%p148_p10), %s500_s12, 1  ;;  %v510_v0 = vmov (!%p148_p10), 0   ;;  %vm197_vm0 = vcmask (!%p148_p10), 261120   ;;  %v195_v8 = vlaneseq (!%p148_p10)  ;;  %vm226_vm3 = vcmask (!%p148_p10), 7168   ;;  %s175_s4 = sand.u32 (!%p148_p10), 1, %s492_s10  }
   0xf   : > { %151 = sbr.rel (%p148_p10) target bundleno = 575 (0x23f), region = 28  ;;  %423 = vset.pattern.permute.xlu0 (!%p148_p10), %v510_v0  ;;  %v511_v27 = vmov (!%p148_p10), 0.0   ;;  %s359_s5 = sshll.u32 (!%p148_p10), %s500_s12, 4  ;;  %vm253_vm5 = vcmask (!%p148_p10), 8192  }
  0x10   : > { %v196_v9 = vand.u32 (!%p148_p10), 127, %v195_v8  ;;  %s176_s7 = scalar_lea.vmem (!%p148_p10), [#allocation2], %s175_s4  ;;  %s599_s20 = scalar_lea.hbm (!%p148_p10), %s648_s2, %s359_s5 }
  0x11   : > { %s269_s8 = sshll.u32 (!%p148_p10), %s176_s7, 4  ;;  %s601_s8 = int_to_ptr.vmem [resolvable:$true] %s269_s8 }
  0x12   : > { %vm249_vm4 = vcmp.eq.s32.totalorder (!%p148_p10), %v196_v9, 0 }
  0x16   : > { %s178_s23 = scalar_select %p177_p11, %s500_s12, 1 }
  0x17   : > { %s256_s12 = scalar_lea.sflag [#allocation3], %s175_s4 }
  0x18   : > { %s356_s24 = sshll.u32 %s178_s23, 2  ;;  %s357_s28 = sshll.u32 %s178_s23, 3 }
  0x19   : > { %s183_s27 = scalar_lea.vmem %s646_s0, %s356_s24  ;;  %s190_s3 = scalar_lea.vmem %s647_s1, %s357_s28 }
  0x1a   : > { %v193_v1 = vld [vmem:[%s183_s27] sm:$0xf]  ;;  %s430_s23 = scalar_lea.vmem %s601_s8, 16  ;;  %s512_s24 = smov [#allocation2]  }
  0x1b   : > { %v194_v2 = vunpack.c.l.bf16 %v193_v1  ;;  %v191_v4 = vld [vmem:[%s190_s3] sm:$0xff]  ;;  %p431_p12 = scmp.ne.s32.totalorder %s601_s8, %s430_s23  ;;  %s434_s25 = sshll.u32 %s512_s24, 4  ;;  %s435_s25 = int_to_ptr.vmem [resolvable:$false] %s434_s25 }
  0x1c   : > { %vm192_vm2 = vcmp.ne.s32.totalorder %v191_v4, 4294967196  ;;  %s436_s26 = scalar_lea.vmem %s435_s25, 32  ;;  %p437_p1 = scmp.lt.s32.totalorder %s601_s8, %s435_s25 }
  0x1d   : > { %v198_v3 = vsel %vm197_vm0, %v194_v2, -inf  ;;  %v358_v28 = vsel %vm192_vm2, 1.0, %v511_v27  ;;  %p432_p13 = pnand %p431_p12, %p568_p4  ;;  %p438_p2 = scmp.lt.s32.totalorder %s436_s26, %s430_s23 }
  0x1e   : > { %199 = vmax.xlane.f32.xlu0 %v198_v3  ;;  %v239_v30 = vsel %vm226_vm3, %v358_v28, 0.0 }
  0x1f   : > { %p433_p0 = pneg %p432_p13  ;;  %p439_p3 = por %p438_p2, %p437_p1 }
  0x21   : > { %p440_p5 = pnand %p439_p3, %p433_p0 }
  0x34   : > { %213 = vperm.xlu0 %423, %v191_v4  }
  0xab   : > { %v200_v5 = vpop.xlane.xlu0 %199 }
  0xac   : > { %v205_v6 = vsub.f32 %v194_v2, %v200_v5  ;;  %v201_v15 = vsub.f32 -inf, %v200_v5 }
  0xae   : > { %v206_v7 = vmul.f32 1.442695, %v205_v6  ;;  %v202_v16 = vmul.f32 1.442695, %v201_v15 }
  0xb0   : > { %424 = vpow2.f32 %v206_v7 }
  0xb1   : > { %426 = vpow2.f32 %v202_v16 }
  0xb3   : > { %v214_v10 = vpop.permute.xlu0 %213 }
  0xb4   : > { %vm215_vm1 = vcmp.eq.s32.totalorder %v196_v9, %v214_v10 }
  0xb5   : > { %v216_v12 = vsel %vm215_vm1, %v194_v2, 0.0 }
  0xb6   : > { %v217_v14 = vsel %vm197_vm0, %v216_v12, 0.0 }
  0xba   : > { %v425_v11 = vpop.eup %424 }
  0xbb   : > { %v208_v13 = vsel %vm197_vm0, %v425_v11, 0.0  ;;  %v427_v17 = vpop.eup %426 }
  0xbc   : > { %209 = vadd.xlane.f32.xlu1 %v208_v13  ;;  %v204_v18 = vmul.f32 0.0, %v427_v17 }
  0xc0   : > { %218 = vadd.xlane.f32.xlu1 %v217_v14 }
 0x149   : > { %v210_v19 = vpop.xlane.xlu1 %209 }
 0x14a   : > { %v211_v20 = vadd.f32 %v210_v19, %v204_v18 }
 0x14c   : > { %428 = vlog2.f32 %v211_v20 }
 0x14d   : > { %v219_v23 = vpop.xlane.xlu1 %218 }
 0x156   : > { %v429_v21 = vpop.eup %428 }
 0x157   : > { %v222_v22 = vmul.f32 0.6931472, %v429_v21 }
 0x159   : > { %v223_v24 = vadd.f32 %v222_v22, %v200_v5 }
 0x15b   : > { %v224_v25 = vsub.f32 %v223_v24, %v219_v23 }
 0x15d   : > { %v225_v26 = vsel %vm192_vm2, %v224_v25, 0.0 }
 0x15e   : > { %v227_v29 = vsel %vm226_vm3, %v225_v26, 0.0 }
 0x15f   : > { %228 = vadd.xlane.f32.xlu1 %v227_v29 }
 0x163   : > { %240 = vadd.xlane.f32.xlu1 %v239_v30 }
 0x1ec   : > { %v229_v31 = vpop.xlane.xlu1 %228 }
 0x1ed   : > { %v230_v32 = vrot.slane %v229_v31, 4 }
 0x1ef   : > { %v231_v33 = vadd.f32 %v230_v32, %v229_v31 }
 0x1f0   : > { %v241_v34 = vpop.xlane.xlu1 %240 }
 0x1f1   : > { %v232_v35 = vrot.slane %v231_v33, 2  ;;  %v242_v36 = vrot.slane %v241_v34, 4 }
 0x1f3   : > { %v243_v37 = vadd.f32 %v242_v36, %v241_v34  ;;  %v233_v38 = vadd.f32 %v232_v35, %v231_v33 }
 0x1f5   : > { %v244_v39 = vrot.slane %v243_v37, 2  ;;  %v234_v40 = vrot.slane %v233_v38, 1 }
 0x1f7   : > { %v245_v41 = vadd.f32 %v244_v39, %v243_v37  ;;  %v235_v42 = vadd.f32 %v234_v40, %v233_v38 }
 0x1f9   : > { %362 = vpush %v235_v42  ;;  %v246_v43 = vrot.slane %v245_v41, 1 }
 0x1fb   : > { %v247_v44 = vadd.f32 %v246_v43, %v245_v41 }
 0x1fd   : > { %364 = vpush %v247_v44 }
 0x22a   : > { %s363_s6 = spop %362 }
 0x22b   : > { %v250_v45 = vstv %s363_s6 }
 0x22e   : > { %s365_s15 = spop %364 }
 0x22f   : > { %v251_v46 = vstv %s365_s15 }
 0x230   : > { %v252_v47 = vsel %vm249_vm4, %v250_v45, %v251_v46 }
 0x231   : > { %254 = vst.msk [vmem:[%s176_s7] sm:$0x1] %vm253_vm5, %v252_v47 }
 0x232   : > { %443 = shalt.err (!%p440_p5)
}
 0x233   : > { %s444_s27 = scalar_lea.hbm %s599_s20, 16  ;;  %s448_s30 = scalar_lea.hbm %s648_s2, 32 }
 0x234   : > { %p445_p6 = scmp.ne.s32.totalorder %s599_s20, %s444_s27  ;;  %p449_p10 = scmp.lt.u32.totalorder %s599_s20, %s648_s2 }
 0x235   : > { %p450_p11 = scmp.lt.u32.totalorder %s448_s30, %s444_s27  ;;  %p452_p13 = scmp.lt.u32.totalorder %s444_s27, %s599_s20 }
 0x236   : > { %p446_p7 = pnand %p445_p6, %p568_p4 }
 0x237   : > { %p451_p12 = por %p450_p11, %p449_p10 }
 0x238   : > { %p447_p9 = pneg %p446_p7 }
 0x239   : > { %p453_p0 = por %p452_p13, %p451_p12 }
 0x23b   : > { %p454_p1 = pnand %p453_p0, %p447_p9 }
 0x23d   : > { %457 = shalt.err (!%p454_p1)
}
 0x23e   : > { %366 = dma.vmem_to_hbm [thread:$0]  (%p568_p4), %s601_s8, 16, %s599_s20, %s256_s12  }
 0x23f PF: > { %p372_p2 = scmp.ge.s32.totalorder %s508_s14, 2  ;;  %s281_s5 = sand.u32 1, %s488_s9  }
 0x240   : > { %s282_s6 = scalar_lea.sflag [#allocation3], %s281_s5 }
 0x241   : > { %p369_p3 = pnand %p372_p2, %p575_p8 }
 0x243   : > { %483 = dma.done.wait (!%p369_p3), %s282_s6, 16  }
 0x244   : > { %485 = vsyncadd (!%p369_p3), %s282_s6, 4294967280  ;;  %s15_s14 = sadd.s32 1, %s508_s14   ;;  %s651_s9 = smov %s492_s10 }
 0x245   : > { %p12_p5 = scmp.ge.s32.totalorder %s15_s14, 4   ;;  %s652_s10 = smov %s496_s11 }
 0x246   : > { %s653_s11 = smov %s581_s22  ;;  %s654_s12 = smov %s504_s13 }
 0x247   : > { %s655_s13 = smov %s657_s17  ;;  %14 = sbr.rel (!%p12_p5) target bundleno = 4 (0x4), region = 66 }
 0x24e   :  { %286 = vsyncpa [#allocation3], 1 }
 0x24f   :  { %288 = vsyncpa [#allocation3 + $0x1], 1 }

</bundles_post_ra>
